<compile_context>
chip_gen: v5e
topology: v5e:2x2
jax: 0.10.0
libtpu: 0.0.40
codegen_flags: <defaults>
</compile_context>

<pallas_src>
import functools

import jax
import jax.numpy as jnp
from jax import lax
from jax.experimental import pallas as pl
from jax.experimental.pallas import tpu as pltpu


_VMEM_LIMIT_BYTES = 48 * 1024 * 1024   # head-room under v7x's 64 MiB physical VMEM
_VMEM_TILE_BUDGET = 30 * 1024 * 1024   # target for per-step (double-buffered) tiles


# ------------------------------- tile helpers ------------------------------- #

def _sublane_granule(dtype):
    # packed rows travel together: 8 rows for f32, 16 for bf16, 32 for int8/fp8
    return max(8, 32 // jnp.dtype(dtype).itemsize)


def _divisor_tile(n, target, granule):
    """Largest divisor of n that is <= target and a multiple of granule, or None."""
    for cand in range(min(n, target), granule - 1, -1):
        if n % cand == 0 and cand % granule == 0:
            return cand
    return None


def _choose_sublane_tile(n, target, dtype):
    for g in (_sublane_granule(dtype), 8):
        t = _divisor_tile(n, target, g)
        if t is not None:
            return t
    return n   # full dimension is always a legal block


def _choose_lane_tile(n, target):
    # Prefer multiples of 256 (one full pass on the 2x256^2 MXUs of v6e/v7x),
    # then 128, else fall back to the full dimension (always legal).
    for g in (256, 128):
        t = _divisor_tile(n, target, g)
        if t is not None:
            return t
    return n


# ----------------------------- qkv projection ------------------------------ #

def _qkv_proj_kernel(x_ref, wq_ref, wk_ref, wv_ref, bq_ref, bk_ref, bv_ref,
                     q_ref, k_ref, v_ref, *, scale):
    # x_ref: (TM, Din); w*: (Din, TN); b*: (1, TN); outputs: (TM, TN)
    x = x_ref[...]
    q = jnp.dot(x, wq_ref[...], preferred_element_type=jnp.float32) + bq_ref[...]
    q_ref[...] = (q * scale).astype(q_ref.dtype)   # softmax scale folded into q
    k_ref[...] = (jnp.dot(x, wk_ref[...], preferred_element_type=jnp.float32)
                  + bk_ref[...]).astype(k_ref.dtype)
    v_ref[...] = (jnp.dot(x, wv_ref[...], preferred_element_type=jnp.float32)
                  + bv_ref[...]).astype(v_ref.dtype)


def pallas_qkv_proj(x, w_q, w_k, w_v, b_q, b_k, b_v, *, scale,
                    tm_target=256, tn_target=512):
    """x: (R, Din) -> (q, k, v), each (R, Dout).  q is pre-scaled by `scale`."""
    R, Din = x.shape
    Dout = w_q.shape[1]
    db = jnp.dtype(x.dtype).itemsize
    TM = _choose_sublane_tile(R, tm_target, x.dtype)

    def vmem_estimate(tn):
        # every block is double-buffered by the BlockSpec pipeline
        return 2 * db * (TM * Din + 3 * Din * tn + 3 * tn + 3 * TM * tn)

    # Keep the full weight matrices resident in VMEM when they fit (fetched
    # once for the entire grid); otherwise tile the columns but keep them on
    # the OUTER grid axis so each weight tile is still streamed exactly once.
    if vmem_estimate(Dout) <= _VMEM_TILE_BUDGET:
        TN = Dout
    else:
        TN = _choose_lane_tile(Dout, tn_target)

    kern = functools.partial(_qkv_proj_kernel, scale=scale)
    out = jax.ShapeDtypeStruct((R, Dout), x.dtype)
    return pl.pallas_call(
        kern,
        out_shape=(out, out, out),
        # columns (j) slow, rows (i) fast: weight blocks (indexed only by j)
        # stay resident across the whole row sweep -> weights read from HBM
        # once instead of R/TM times.
        grid=(Dout // TN, R // TM),
        in_specs=[
            pl.BlockSpec((TM, Din), lambda j, i: (i, 0)),
            pl.BlockSpec((Din, TN), lambda j, i: (0, j)),
            pl.BlockSpec((Din, TN), lambda j, i: (0, j)),
            pl.BlockSpec((Din, TN), lambda j, i: (0, j)),
            pl.BlockSpec((1, TN), lambda j, i: (0, j)),
            pl.BlockSpec((1, TN), lambda j, i: (0, j)),
            pl.BlockSpec((1, TN), lambda j, i: (0, j)),
        ],
        out_specs=(
            pl.BlockSpec((TM, TN), lambda j, i: (i, j)),
            pl.BlockSpec((TM, TN), lambda j, i: (i, j)),
            pl.BlockSpec((TM, TN), lambda j, i: (i, j)),
        ),
        compiler_params=pltpu.CompilerParams(
            dimension_semantics=("parallel", "parallel"),
            vmem_limit_bytes=_VMEM_LIMIT_BYTES),
    )(x, w_q, w_k, w_v,
      b_q.reshape(1, Dout), b_k.reshape(1, Dout), b_v.reshape(1, Dout))


# ------------------------------- tiled linear ------------------------------- #

def _linear_kernel(x_ref, w_ref, b_ref, o_ref):
    o_ref[...] = (jnp.dot(x_ref[...], w_ref[...],
                          preferred_element_type=jnp.float32)
                  + b_ref[...]).astype(o_ref.dtype)


def pallas_linear(x, w, b, *, tm_target=256, tn_target=512):
    """x: (R, Din) @ w: (Din, Dout) + b: (Dout,) -> (R, Dout)."""
    R, Din = x.shape
    Dout = w.shape[1]
    db = jnp.dtype(x.dtype).itemsize
    TM = _choose_sublane_tile(R, tm_target, x.dtype)

    def vmem_estimate(tn):
        return 2 * db * (TM * Din + Din * tn + tn + TM * tn)

    if vmem_estimate(Dout) <= _VMEM_TILE_BUDGET:
        TN = Dout
    else:
        TN = _choose_lane_tile(Dout, tn_target)

    return pl.pallas_call(
        _linear_kernel,
        out_shape=jax.ShapeDtypeStruct((R, Dout), x.dtype),
        grid=(Dout // TN, R // TM),   # weights resident across the fast row axis
        in_specs=[
            pl.BlockSpec((TM, Din), lambda j, i: (i, 0)),
            pl.BlockSpec((Din, TN), lambda j, i: (0, j)),
            pl.BlockSpec((1, TN), lambda j, i: (0, j)),
        ],
        out_specs=pl.BlockSpec((TM, TN), lambda j, i: (i, j)),
        compiler_params=pltpu.CompilerParams(
            dimension_semantics=("parallel", "parallel"),
            vmem_limit_bytes=_VMEM_LIMIT_BYTES),
    )(x, w, b.reshape(1, Dout))


# ---------------------------- flash attention ------------------------------- #

def _flash_attn_kernel(q_ref, k_ref, v_ref, o_ref, m_sc, l_sc, acc_sc, *,
                       num_heads, head_dim):
    # q_ref: (1, TQ, nH*hd)  (already scaled by head_dim**-0.5)
    # k_ref/v_ref: (1, TK, nH*hd); o_ref: (1, TQ, nH*hd)
    # m_sc/l_sc: (nH, TQ, 1) f32; acc_sc: (nH, TQ, hd) f32
    j = pl.program_id(2)

    @pl.when(j == 0)
    def _init():
        m_sc[...] = jnp.full(m_sc.shape, -jnp.inf, dtype=m_sc.dtype)
        l_sc[...] = jnp.zeros(l_sc.shape, dtype=l_sc.dtype)
        acc_sc[...] = jnp.zeros(acc_sc.shape, dtype=acc_sc.dtype)

    q = q_ref[0]   # (TQ, nH*hd)
    k = k_ref[0]   # (TK, nH*hd)
    v = v_ref[0]   # (TK, nH*hd)

    # Static unroll over heads: back-to-back MXU matmuls per k-tile.
    # TODO(synk): for head_dim < 128 the per-head lane slices are not
    # 128-aligned; zero-padding head_dim to 128 in the qkv weights would make
    # them lane-dense and deepen the QK^T contraction.
    for h in range(num_heads):
        sl = slice(h * head_dim, (h + 1) * head_dim)
        q_h, k_h, v_h = q[:, sl], k[:, sl], v[:, sl]
        # (TQ, TK) f32 scores: with TQ<=256 and TK<=128 this tile is <=128 KiB,
        # so s / p stay inside the vreg file instead of spilling to VMEM.
        s = lax.dot_general(q_h, k_h, (((1,), (1,)), ((), ())),
                            preferred_element_type=jnp.float32)
        m_prev = m_sc[h]                                      # (TQ, 1)
        m_new = jnp.maximum(m_prev, jnp.max(s, axis=-1, keepdims=True))
        alpha = jnp.exp(m_prev - m_new)
        p = jnp.exp(s - m_new)
        l_sc[h] = alpha * l_sc[h] + jnp.sum(p, axis=-1, keepdims=True)
        # bf16 probabilities / values on the PV leg (f32 accumulation): full
        # MXU rate and half the register pressure even when the model is f32.
        acc_sc[h] = alpha * acc_sc[h] + jnp.dot(
            p.astype(jnp.bfloat16), v_h.astype(jnp.bfloat16),
            preferred_element_type=jnp.float32)
        m_sc[h] = m_new

    @pl.when(j == pl.num_programs(2) - 1)
    def _finalize():
        # Normalise each head and write it straight into its lane slice of the
        # output block (no jnp.concatenate copy); the HBM writeback of the
        # full (TQ, nH*hd) block stays lane-dense.
        for h in range(num_heads):
            sl = slice(h * head_dim, (h + 1) * head_dim)
            o_ref[0, :, sl] = (acc_sc[h] *
                               pl.reciprocal(l_sc[h], approx=True)
                               ).astype(o_ref.dtype)


def pallas_flash_attention(q, k, v, num_heads, *, tq_target=256, tk_target=128):
    """q: (B, Lq, D), k/v: (B, Lk, D) with D = num_heads*head_dim -> (B, Lq, D).

    q is expected to be pre-scaled by head_dim**-0.5 (done in the qkv kernel).
    """
    B, Lq, D = q.shape
    Lk = k.shape[1]
    head_dim = D // num_heads
    TQ = _choose_sublane_tile(Lq, tq_target, q.dtype)
    TK = _choose_sublane_tile(Lk, tk_target, k.dtype)
    kern = functools.partial(_flash_attn_kernel, num_heads=num_heads,
                             head_dim=head_dim)
    return pl.pallas_call(
        kern,
        out_shape=jax.ShapeDtypeStruct((B, Lq, D), q.dtype),
        # (B, Lq tiles) are both "parallel" (v7x megacore needs B*Lq/TQ >= 2
        # independent units); Lk is the online-softmax reduction ("arbitrary").
        grid=(B, Lq // TQ, Lk // TK),
        in_specs=[
            pl.BlockSpec((1, TQ, D), lambda b, i, j: (b, i, 0)),
            pl.BlockSpec((1, TK, D), lambda b, i, j: (b, j, 0)),
            pl.BlockSpec((1, TK, D), lambda b, i, j: (b, j, 0)),
        ],
        out_specs=pl.BlockSpec((1, TQ, D), lambda b, i, j: (b, i, 0)),
        scratch_shapes=[
            pltpu.VMEM((num_heads, TQ, 1), jnp.float32),         # running max m
            pltpu.VMEM((num_heads, TQ, 1), jnp.float32),         # running sum l
            pltpu.VMEM((num_heads, TQ, head_dim), jnp.float32),  # un-normalised acc
        ],
        compiler_params=pltpu.CompilerParams(
            dimension_semantics=("parallel", "parallel", "arbitrary"),
            vmem_limit_bytes=_VMEM_LIMIT_BYTES),
    )(q, k, v)


# ------------------------------ module wrapper ------------------------------ #

def max_pool_nhwc(x, stride):
    """permute -> nn.MaxPool2d(stride, stride) -> permute of SAM2's do_pool."""
    B, H, W, C = x.shape
    x = x.reshape(B, H // stride, stride, W // stride, stride, C)
    return jnp.max(x, axis=(2, 4))


class MultiScaleAttentionPallas:
    def __init__(self, dim, dim_out, num_heads, q_pool_stride=None, key=None):
        self.dim = dim
        self.dim_out = dim_out
        self.num_heads = num_heads
        self.head_dim = dim_out // num_heads
        self.scale = self.head_dim ** (-0.5)
        self.q_pool_stride = q_pool_stride  # None => q_pool=None in PyTorch

        key = jax.random.PRNGKey(0) if key is None else key
        k1, k2, k3, k4 = jax.random.split(key, 4)
        # synthetic params matching nn.Linear(dim, 3*dim_out) / nn.Linear(dim_out, dim_out);
        # the 3*dim_out columns are laid out [q | k | v], split once at init.
        w_qkv = jax.random.normal(k1, (dim, 3 * dim_out), jnp.float32) * 0.05
        b_qkv = jax.random.normal(k2, (3 * dim_out,), jnp.float32) * 0.05
        self.w_q = w_qkv[:, :dim_out]
        self.w_k = w_qkv[:, dim_out:2 * dim_out]
        self.w_v = w_qkv[:, 2 * dim_out:]
        self.b_q = b_qkv[:dim_out]
        self.b_k = b_qkv[dim_out:2 * dim_out]
        self.b_v = b_qkv[2 * dim_out:]
        self.w_proj = jax.random.normal(k3, (dim_out, dim_out), jnp.float32) * 0.05
        self.b_proj = jax.random.normal(k4, (dim_out,), jnp.float32) * 0.05

    def __call__(self, x):
        B, H, W, _ = x.shape
        L = H * W

        # qkv projection (Pallas): q comes out pre-scaled by head_dim**-0.5,
        # and q/k/v are three separate contiguous outputs (no strided split).
        q, k, v = pallas_qkv_proj(
            x.reshape(B * L, self.dim),
            self.w_q, self.w_k, self.w_v, self.b_q, self.b_k, self.b_v,
            scale=self.scale)

        # optional q pooling: MaxPool2d(s, s) == reshape + max; commutes exactly
        # with the (positive) scale already folded into q.
        if self.q_pool_stride:
            s = self.q_pool_stride
            q = max_pool_nhwc(q.reshape(B, H, W, self.dim_out), s)
            H, W = H // s, W // s
        Lq = H * W

        # No HBM transposes: q/k/v stay in (B, L, num_heads*head_dim) layout;
        # head selection happens with static lane slices inside the kernel.
        q = q.reshape(B, Lq, self.dim_out)
        k = k.reshape(B, L, self.dim_out)
        v = v.reshape(B, L, self.dim_out)
        o = pallas_flash_attention(q, k, v, self.num_heads)   # (B, Lq, dim_out)

        # output projection (Pallas)
        # TODO(synk): for SAM2 window-attention tile sizes, qkv+attention+proj
        # could be fused into a single pallas_call to save two more HBM passes.
        o = pallas_linear(o.reshape(B * Lq, self.dim_out), self.w_proj, self.b_proj)
        return o.reshape(B, H, W, self.dim_out)


# ----------------------------- pure-JAX reference ---------------------------- #

def reference_forward(mod: MultiScaleAttentionPallas, x):
    B, H, W, _ = x.shape
    L = H * W
    xr = x.reshape(B, L, mod.dim)
    q = xr @ mod.w_q + mod.b_q
    k = xr @ mod.w_k + mod.b_k
    v = xr @ mod.w_v + mod.b_v
    if mod.q_pool_stride:
        s = mod.q_pool_stride
        q = max_pool_nhwc(q.reshape(B, H, W, mod.dim_out), s)
        H, W = H // s, W // s
    Lq = H * W
    nH, hd = mod.num_heads, mod.head_dim
    qh = q.reshape(B, Lq, nH, hd).transpose(0, 2, 1, 3)
    kh = k.reshape(B, L, nH, hd).transpose(0, 2, 1, 3)
    vh = v.reshape(B, L, nH, hd).transpose(0, 2, 1, 3)
    s_ = jnp.einsum("bhqd,bhkd->bhqk", qh, kh) * mod.scale
    p = jax.nn.softmax(s_, axis=-1)
    o = jnp.einsum("bhqk,bhkd->bhqd", p, vh)
    o = o.transpose(0, 2, 1, 3).reshape(B, Lq, mod.dim_out)
    o = o @ mod.w_proj + mod.b_proj
    return o.reshape(B, H, W, mod.dim_out)


# ------------------------------------ main ----------------------------------- #

if __name__ == "__main__":
    B, H, W = 2, 8, 8
    dim, dim_out, num_heads = 32, 32, 2

    key = jax.random.PRNGKey(0)
    kx, kp = jax.random.split(key)
    x = jax.random.normal(kx, (B, H, W, dim), jnp.float32)

    # q_pool present (MaxPool2d(2, 2)) -> queries pooled to 4x4
    mod = MultiScaleAttentionPallas(dim, dim_out, num_heads,
                                    q_pool_stride=2, key=kp)
    out = jax.block_until_ready(mod(x))
    ref = reference_forward(mod, x)
    assert out.shape == (B, H // 2, W // 2, dim_out), out.shape
    # tolerance covers the bf16 PV matmul and the approx EUP reciprocal
    assert jnp.allclose(out, ref, atol=1e-2, rtol=1e-2), "mismatch vs reference"

    # q_pool=None path (output keeps H, W)
    mod2 = MultiScaleAttentionPallas(dim, dim_out, num_heads,
                                     q_pool_stride=None, key=kp)
    out2 = jax.block_until_ready(mod2(x))
    ref2 = reference_forward(mod2, x)
    assert out2.shape == (B, H, W, dim_out), out2.shape
    assert jnp.allclose(out2, ref2, atol=1e-2, rtol=1e-2), "mismatch vs reference"

    print("KERNEL_OK")
</pallas_src>

<mosaic_0001>
module attributes {stable_mosaic.version = 11 : i64} {
  func.func @_qkv_proj_kernel(%arg0: i32, %arg1: i32, %arg2: memref<128x32xf32, #tpu.memory_space<vmem>>, %arg3: memref<32x32xf32, #tpu.memory_space<vmem>>, %arg4: memref<32x32xf32, #tpu.memory_space<vmem>>, %arg5: memref<32x32xf32, #tpu.memory_space<vmem>>, %arg6: memref<1x32xf32, #tpu.memory_space<vmem>>, %arg7: memref<1x32xf32, #tpu.memory_space<vmem>>, %arg8: memref<1x32xf32, #tpu.memory_space<vmem>>, %arg9: memref<128x32xf32, #tpu.memory_space<vmem>>, %arg10: memref<128x32xf32, #tpu.memory_space<vmem>>, %arg11: memref<128x32xf32, #tpu.memory_space<vmem>>) attributes {dimension_semantics = [#tpu.dimension_semantics<parallel>, #tpu.dimension_semantics<parallel>], iteration_bounds = array<i64: 1, 1>, scalar_prefetch = 0 : i64, scratch_operands = 0 : i64, tpu.core_type = #tpu.core_type<tc>, window_params = [{transform_indices = @transform_0, window_bounds = array<i64: 128, 32>}, {transform_indices = @transform_1, window_bounds = array<i64: 32, 32>}, {transform_indices = @transform_2, window_bounds = array<i64: 32, 32>}, {transform_indices = @transform_3, window_bounds = array<i64: 32, 32>}, {transform_indices = @transform_4, window_bounds = array<i64: 1, 32>}, {transform_indices = @transform_5, window_bounds = array<i64: 1, 32>}, {transform_indices = @transform_6, window_bounds = array<i64: 1, 32>}, {transform_indices = @transform_7, window_bounds = array<i64: 128, 32>}, {transform_indices = @transform_8, window_bounds = array<i64: 128, 32>}, {transform_indices = @transform_9, window_bounds = array<i64: 128, 32>}]} {
    %c0 = arith.constant 0 : index
    %c0_0 = arith.constant 0 : index
    %0 = vector.load %arg2[%c0, %c0_0] : memref<128x32xf32, #tpu.memory_space<vmem>>, vector<128x32xf32>
    %c0_1 = arith.constant 0 : index
    %c0_2 = arith.constant 0 : index
    %1 = vector.load %arg3[%c0_1, %c0_2] : memref<32x32xf32, #tpu.memory_space<vmem>>, vector<32x32xf32>
    %cst = arith.constant dense<0.000000e+00> : vector<128x32xf32>
    %2 = tpu.matmul %0, %1, %cst {dimension_numbers = #tpu.dot_dimension_numbers<[1], [0], [0], [1], [0, 0, 1, 1], [], []>} : vector<128x32xf32>, vector<32x32xf32>, vector<128x32xf32> -> vector<128x32xf32>
    %c0_3 = arith.constant 0 : index
    %c0_4 = arith.constant 0 : index
    %3 = vector.load %arg6[%c0_3, %c0_4] : memref<1x32xf32, #tpu.memory_space<vmem>>, vector<1x32xf32>
    %4 = vector.broadcast %3 : vector<1x32xf32> to vector<128x32xf32>
    %5 = arith.addf %2, %4 : vector<128x32xf32>
    %cst_5 = arith.constant 2.500000e-01 : f32
    %6 = vector.broadcast %cst_5 : f32 to vector<128x32xf32>
    %7 = arith.mulf %5, %6 : vector<128x32xf32>
    %c0_6 = arith.constant 0 : index
    %c0_7 = arith.constant 0 : index
    %8 = vector.load %arg9[%c0_6, %c0_7] : memref<128x32xf32, #tpu.memory_space<vmem>>, vector<128x32xf32>
    tpu.vector_store %arg9[%c0_6, %c0_7], %7 {strides = array<i32>} : memref<128x32xf32, #tpu.memory_space<vmem>>, vector<128x32xf32>,
    %c0_8 = arith.constant 0 : index
    %c0_9 = arith.constant 0 : index
    %9 = vector.load %arg4[%c0_8, %c0_9] : memref<32x32xf32, #tpu.memory_space<vmem>>, vector<32x32xf32>
    %cst_10 = arith.constant dense<0.000000e+00> : vector<128x32xf32>
    %10 = tpu.matmul %0, %9, %cst_10 {dimension_numbers = #tpu.dot_dimension_numbers<[1], [0], [0], [1], [0, 0, 1, 1], [], []>} : vector<128x32xf32>, vector<32x32xf32>, vector<128x32xf32> -> vector<128x32xf32>
    %c0_11 = arith.constant 0 : index
    %c0_12 = arith.constant 0 : index
    %11 = vector.load %arg7[%c0_11, %c0_12] : memref<1x32xf32, #tpu.memory_space<vmem>>, vector<1x32xf32>
    %12 = vector.broadcast %11 : vector<1x32xf32> to vector<128x32xf32>
    %13 = arith.addf %10, %12 : vector<128x32xf32>
    %c0_13 = arith.constant 0 : index
    %c0_14 = arith.constant 0 : index
    %14 = vector.load %arg10[%c0_13, %c0_14] : memref<128x32xf32, #tpu.memory_space<vmem>>, vector<128x32xf32>
    tpu.vector_store %arg10[%c0_13, %c0_14], %13 {strides = array<i32>} : memref<128x32xf32, #tpu.memory_space<vmem>>, vector<128x32xf32>,
    %c0_15 = arith.constant 0 : index
    %c0_16 = arith.constant 0 : index
    %15 = vector.load %arg5[%c0_15, %c0_16] : memref<32x32xf32, #tpu.memory_space<vmem>>, vector<32x32xf32>
    %cst_17 = arith.constant dense<0.000000e+00> : vector<128x32xf32>
    %16 = tpu.matmul %0, %15, %cst_17 {dimension_numbers = #tpu.dot_dimension_numbers<[1], [0], [0], [1], [0, 0, 1, 1], [], []>} : vector<128x32xf32>, vector<32x32xf32>, vector<128x32xf32> -> vector<128x32xf32>
    %c0_18 = arith.constant 0 : index
    %c0_19 = arith.constant 0 : index
    %17 = vector.load %arg8[%c0_18, %c0_19] : memref<1x32xf32, #tpu.memory_space<vmem>>, vector<1x32xf32>
    %18 = vector.broadcast %17 : vector<1x32xf32> to vector<128x32xf32>
    %19 = arith.addf %16, %18 : vector<128x32xf32>
    %c0_20 = arith.constant 0 : index
    %c0_21 = arith.constant 0 : index
    %20 = vector.load %arg11[%c0_20, %c0_21] : memref<128x32xf32, #tpu.memory_space<vmem>>, vector<128x32xf32>
    tpu.vector_store %arg11[%c0_20, %c0_21], %19 {strides = array<i32>} : memref<128x32xf32, #tpu.memory_space<vmem>>, vector<128x32xf32>,
    return
  }
  func.func @transform_0(%arg0: i32, %arg1: i32) -> (i32, i32) {
    %c0_i32 = arith.constant 0 : i32
    %c0_i32_0 = arith.constant 0 : i32
    return %arg1, %c0_i32 : i32, i32
  }
  func.func @transform_1(%arg0: i32, %arg1: i32) -> (i32, i32) {
    %c0_i32 = arith.constant 0 : i32
    %c0_i32_0 = arith.constant 0 : i32
    return %c0_i32, %arg0 : i32, i32
  }
  func.func @transform_2(%arg0: i32, %arg1: i32) -> (i32, i32) {
    %c0_i32 = arith.constant 0 : i32
    %c0_i32_0 = arith.constant 0 : i32
    return %c0_i32, %arg0 : i32, i32
  }
  func.func @transform_3(%arg0: i32, %arg1: i32) -> (i32, i32) {
    %c0_i32 = arith.constant 0 : i32
    %c0_i32_0 = arith.constant 0 : i32
    return %c0_i32, %arg0 : i32, i32
  }
  func.func @transform_4(%arg0: i32, %arg1: i32) -> (i32, i32) {
    %c0_i32 = arith.constant 0 : i32
    %c0_i32_0 = arith.constant 0 : i32
    return %c0_i32, %arg0 : i32, i32
  }
  func.func @transform_5(%arg0: i32, %arg1: i32) -> (i32, i32) {
    %c0_i32 = arith.constant 0 : i32
    %c0_i32_0 = arith.constant 0 : i32
    return %c0_i32, %arg0 : i32, i32
  }
  func.func @transform_6(%arg0: i32, %arg1: i32) -> (i32, i32) {
    %c0_i32 = arith.constant 0 : i32
    %c0_i32_0 = arith.constant 0 : i32
    return %c0_i32, %arg0 : i32, i32
  }
  func.func @transform_7(%arg0: i32, %arg1: i32) -> (i32, i32) {
    %c0_i32 = arith.constant 0 : i32
    return %arg1, %arg0 : i32, i32
  }
  func.func @transform_8(%arg0: i32, %arg1: i32) -> (i32, i32) {
    %c0_i32 = arith.constant 0 : i32
    return %arg1, %arg0 : i32, i32
  }
  func.func @transform_9(%arg0: i32, %arg1: i32) -> (i32, i32) {
    %c0_i32 = arith.constant 0 : i32
    return %arg1, %arg0 : i32, i32
  }
}

</mosaic_0001>

<bundles_post_ra>
// kernel: tpu_custom_call.1
= control target key start
LH: loop header
LB: loop body
LE: loop exit
PB: predicated region body
PF: predicated region fallthrough
CT: control target
= control target key end

     0   :  { %vm53_vm0 = vcmask 261120   ;;  %s894_s1 = inlined_call_operand.vmem [shape: f32[32,32], index: 1, kind: input, shape index: {}]   ;;  %s895_s3 = inlined_call_operand.vmem [shape: f32[32,32], index: 3, kind: input, shape index: {}]   ;;  %s896_s2 = inlined_call_operand.vmem [shape: f32[32,32], index: 2, kind: input, shape index: {}]   ;;  %s897_s0 = inlined_call_operand.vmem [shape: f32[128,32], index: 0, kind: input, shape index: {}]   ;;  %s898_s4 = inlined_call_operand.vmem [shape: f32[1,32], index: 4, kind: input, shape index: {}]   ;;  %s899_s5 = inlined_call_operand.vmem [shape: f32[1,32], index: 5, kind: input, shape index: {}]   ;;  %s900_s6 = inlined_call_operand.vmem [shape: f32[1,32], index: 6, kind: input, shape index: {}]   ;;  %s901_s7 = inlined_call_operand.vmem [shape: f32[128,32], index: 7, kind: output, shape index: {0}]   ;;  %s902_s8 = inlined_call_operand.vmem [shape: f32[128,32], index: 8, kind: output, shape index: {1}]   ;;  %s903_s9 = inlined_call_operand.vmem [shape: f32[128,32], index: 9, kind: output, shape index: {2}]  }
   0x1   :  { %v48_v0 = vld [vmem:[%s894_s1 + $0x18] sm:$0xff]  ;;  %v47_v2 = vld [vmem:[%s894_s1 + $0x10] sm:$0xff]  ;;  %v46_v4 = vld [vmem:[%s894_s1 + $0x8] sm:$0xff] }
   0x2   :  { %v291_v1 = vld [vmem:[%s895_s3 + $0x18] sm:$0xff]  ;;  %437 = vmatpush.msra.mxu3 %v48_v0  ;;  %v290_v3 = vld [vmem:[%s895_s3 + $0x10] sm:$0xff]  ;;  %114 = vmatpush.msra.mxu0 %v48_v0  ;;  %v289_v5 = vld [vmem:[%s895_s3 + $0x8] sm:$0xff] }
   0x3   :  { %308 = vmatpush.msra.mxu2 %v291_v1  ;;  %v202_v6 = vld [vmem:[%s896_s2 + $0x18] sm:$0xff]  ;;  %v201_v7 = vld [vmem:[%s896_s2 + $0x10] sm:$0xff]  ;;  %v45_v8 = vld [vmem:[%s894_s1] sm:$0xff] }
   0x4   :  { %438 = vmatpush.msra.mxu3 %v47_v2  ;;  %115 = vmatpush.msra.mxu0 %v47_v2  ;;  %v288_v9 = vld [vmem:[%s895_s3] sm:$0xff]  ;;  %v200_v12 = vld [vmem:[%s896_s2 + $0x8] sm:$0xff]  ;;  %v43_v16 = vld [vmem:[%s897_s0 + $0x70] sm:$0xff] }
   0x5   :  { %309 = vmatpush.msra.mxu2 %v290_v3  ;;  %219 = vmatpush.msra.mxu1 %v202_v6  ;;  %v535_v10 = vld [vmem:[%s897_s0 + $0x60] sm:$0xff]  ;;  %v42_v14 = vld [vmem:[%s897_s0 + $0x68] sm:$0xff]  ;;  %v31_v17 = vld [vmem:[%s897_s0 + $0x10] sm:$0xff] }
   0x6   :  { %439 = vmatpush.msra.mxu3 %v46_v4  ;;  %v29_v11 = vld [vmem:[%s897_s0] sm:$0xff]  ;;  %116 = vmatpush.msra.mxu0 %v46_v4  ;;  %v30_v15 = vld [vmem:[%s897_s0 + $0x8] sm:$0xff]  ;;  %v44_v18 = vld [vmem:[%s897_s0 + $0x78] sm:$0xff] }
   0x7   :  { %310 = vmatpush.msra.mxu2 %v289_v5  ;;  %220 = vmatpush.msra.mxu1 %v201_v7  ;;  %v199_v13 = vld [vmem:[%s896_s2] sm:$0xff]  ;;  %v32_v19 = vld [vmem:[%s897_s0 + $0x18] sm:$0xff]  ;;  %v34_v21 = vld [vmem:[%s897_s0 + $0x28] sm:$0xff] }
   0x8   :  { %440 = vmatpush.msra.mxu3 %v45_v8  ;;  %117 = vmatpush.msra.mxu0 %v45_v8  ;;  %v33_v20 = vld [vmem:[%s897_s0 + $0x20] sm:$0xff]  ;;  %v35_v22 = vld [vmem:[%s897_s0 + $0x30] sm:$0xff]  ;;  %v36_v23 = vld [vmem:[%s897_s0 + $0x38] sm:$0xff] }
   0x9   :  { %311 = vmatpush.msra.mxu2 %v288_v9  ;;  %401 = vmatmul.msk.f32.vlgmr.msra.gmra.mxu3 %vm53_vm0, %v535_v10  ;;  %v37_v24 = vld [vmem:[%s897_s0 + $0x40] sm:$0xff]  ;;  %v38_v25 = vld [vmem:[%s897_s0 + $0x48] sm:$0xff]  ;;  %v39_v26 = vld [vmem:[%s897_s0 + $0x50] sm:$0xff] }
   0xa   :  { %421 = vmatmul.msk.f32.vlgmr.msra.gmra.mxu2 %vm53_vm0, %v29_v11  ;;  %441 = vmatpush.msrb.mxu3 %v202_v6  ;;  %v40_v27 = vld [vmem:[%s897_s0 + $0x58] sm:$0xff]  ;;  %v642_v28 = vld [vmem:[%s898_s4] ss:$0 sm:$0xff] }
   0xb   :  { %221 = vmatpush.msra.mxu1 %v200_v12  ;;  %389 = vmatmul.msk.f32.vlgmr.msra.gmra.mxu0 %vm53_vm0, %v29_v11  ;;  %v647_v30 = vld [vmem:[%s899_s5] ss:$0 sm:$0xff] }
   0xc   :  { %442 = vmatpush.msrb.mxu3 %v201_v7  ;;  %v653_v32 = vld [vmem:[%s900_s6] ss:$0 sm:$0xff] }
   0xd   :  { %222 = vmatpush.msra.mxu1 %v199_v13 }
   0xe   :  { %405 = vmatmul.msk.f32.vlgmr.msra.gmra.mxu1 %vm53_vm0, %v29_v11  ;;  %443 = vmatpush.msrb.mxu3 %v200_v12 }
  0x10   :  { %444 = vmatpush.msrb.mxu3 %v199_v13 }
  0x11   :  { %402 = vmatmul.msk.f32.gmra.mxu3 %vm53_vm0, %v42_v14 }
  0x12   :  { %422 = vmatmul.msk.f32.gmra.mxu2 %vm53_vm0, %v30_v15  ;;  %445 = vmatpush.msra.mxu3 %v291_v1 }
  0x13   :  { %390 = vmatmul.msk.f32.gmra.mxu0 %vm53_vm0, %v30_v15 }
  0x14   :  { %446 = vmatpush.msra.mxu3 %v290_v3 }
  0x16   :  { %406 = vmatmul.msk.f32.gmra.mxu1 %vm53_vm0, %v30_v15  ;;  %447 = vmatpush.msra.mxu3 %v289_v5 }
  0x18   :  { %448 = vmatpush.msra.mxu3 %v288_v9 }
  0x19   :  { %403 = vmatmul.msk.f32.gmra.mxu3 %vm53_vm0, %v43_v16 }
  0x1a   :  { %423 = vmatmul.msk.f32.gmra.mxu2 %vm53_vm0, %v31_v17 }
  0x1b   :  { %391 = vmatmul.msk.f32.gmra.mxu0 %vm53_vm0, %v31_v17 }
  0x1e   :  { %407 = vmatmul.msk.f32.gmra.mxu1 %vm53_vm0, %v31_v17 }
  0x21   :  { %404 = vmatmul.msk.f32.gmra.mxu3 %vm53_vm0, %v44_v18 }
  0x22   :  { %424 = vmatmul.msk.f32.gmra.mxu2 %vm53_vm0, %v32_v19 }
  0x23   :  { %392 = vmatmul.msk.f32.gmra.mxu0 %vm53_vm0, %v32_v19 }
  0x26   :  { %408 = vmatmul.msk.f32.gmra.mxu1 %vm53_vm0, %v32_v19 }
  0x29   :  { %417 = vmatmul.msk.f32.vlgmr.msrb.gmra.mxu3 %vm53_vm0, %v535_v10 }
  0x2a   :  { %425 = vmatmul.msk.f32.gmra.mxu2 %vm53_vm0, %v33_v20 }
  0x2b   :  { %393 = vmatmul.msk.f32.gmra.mxu0 %vm53_vm0, %v33_v20 }
  0x2e   :  { %409 = vmatmul.msk.f32.gmra.mxu1 %vm53_vm0, %v33_v20 }
  0x31   :  { %418 = vmatmul.msk.f32.gmra.mxu3 %vm53_vm0, %v42_v14 }
  0x32   :  { %426 = vmatmul.msk.f32.gmra.mxu2 %vm53_vm0, %v34_v21 }
  0x33   :  { %394 = vmatmul.msk.f32.gmra.mxu0 %vm53_vm0, %v34_v21 }
  0x36   :  { %410 = vmatmul.msk.f32.gmra.mxu1 %vm53_vm0, %v34_v21 }
  0x39   :  { %419 = vmatmul.msk.f32.gmra.mxu3 %vm53_vm0, %v43_v16 }
  0x3a   :  { %427 = vmatmul.msk.f32.gmra.mxu2 %vm53_vm0, %v35_v22 }
  0x3b   :  { %395 = vmatmul.msk.f32.gmra.mxu0 %vm53_vm0, %v35_v22 }
  0x3e   :  { %411 = vmatmul.msk.f32.gmra.mxu1 %vm53_vm0, %v35_v22 }
  0x41   :  { %420 = vmatmul.msk.f32.gmra.mxu3 %vm53_vm0, %v44_v18 }
  0x42   :  { %428 = vmatmul.msk.f32.gmra.mxu2 %vm53_vm0, %v36_v23 }
  0x43   :  { %396 = vmatmul.msk.f32.gmra.mxu0 %vm53_vm0, %v36_v23 }
  0x46   :  { %412 = vmatmul.msk.f32.gmra.mxu1 %vm53_vm0, %v36_v23 }
  0x49   :  { %433 = vmatmul.msk.f32.vlgmr.msra.gmra.mxu3 %vm53_vm0, %v535_v10 }
  0x4a   :  { %429 = vmatmul.msk.f32.gmra.mxu2 %vm53_vm0, %v37_v24 }
  0x4b   :  { %397 = vmatmul.msk.f32.gmra.mxu0 %vm53_vm0, %v37_v24 }
  0x4e   :  { %413 = vmatmul.msk.f32.gmra.mxu1 %vm53_vm0, %v37_v24 }
  0x51   :  { %434 = vmatmul.msk.f32.gmra.mxu3 %vm53_vm0, %v42_v14 }
  0x52   :  { %430 = vmatmul.msk.f32.gmra.mxu2 %vm53_vm0, %v38_v25 }
  0x53   :  { %398 = vmatmul.msk.f32.gmra.mxu0 %vm53_vm0, %v38_v25 }
  0x56   :  { %414 = vmatmul.msk.f32.gmra.mxu1 %vm53_vm0, %v38_v25 }
  0x59   :  { %435 = vmatmul.msk.f32.gmra.mxu3 %vm53_vm0, %v43_v16 }
  0x5a   :  { %431 = vmatmul.msk.f32.gmra.mxu2 %vm53_vm0, %v39_v26 }
  0x5b   :  { %399 = vmatmul.msk.f32.gmra.mxu0 %vm53_vm0, %v39_v26 }
  0x5e   :  { %415 = vmatmul.msk.f32.gmra.mxu1 %vm53_vm0, %v39_v26 }
  0x61   :  { %436 = vmatmul.msk.f32.gmra.mxu3 %vm53_vm0, %v44_v18 }
  0x62   :  { %432 = vmatmul.msk.f32.gmra.mxu2 %vm53_vm0, %v40_v27 }
  0x63   :  { %400 = vmatmul.msk.f32.gmra.mxu0 %vm53_vm0, %v40_v27 }
  0x66   :  { %416 = vmatmul.msk.f32.gmra.mxu1 %vm53_vm0, %v40_v27 }
  0x88   :  { %v119_v29 = vpop.f32.mrf.mxu0 }
  0x89   :  { %v120_v31 = vadd.f32 %v642_v28, %v119_v29 }
  0x8b   :  { %v167_v33 = vmul.f32 0.25, %v120_v31  ;;  %v224_v34 = vpop.f32.mrf.mxu1 }
  0x8c   :  { %v155_v35 = vpop.f32.mrf.mxu3  ;;  %v225_v36 = vadd.f32 %v647_v30, %v224_v34 }
  0x8d   :  { %v313_v37 = vpop.f32.mrf.mxu2  ;;  %183 = vst.msk [vmem:[%s901_s7] sm:$0xff] %vm53_vm0, %v167_v33  ;;  %v156_v38 = vadd.f32 %v642_v28, %v155_v35 }
  0x8e   :  { %v314_v39 = vadd.f32 %v653_v32, %v313_v37  ;;  %272 = vst.msk [vmem:[%s902_s8] sm:$0xff] %vm53_vm0, %v225_v36 }
  0x8f   :  { %v179_v40 = vmul.f32 0.25, %v156_v38 }
  0x90   :  { %361 = vst.msk [vmem:[%s903_s9] sm:$0xff] %vm53_vm0, %v314_v39  ;;  %v122_v41 = vpop.f32.mrf.mxu0 }
  0x91   :  { %195 = vst.msk [vmem:[%s901_s7 + $0x60] sm:$0xff] %vm53_vm0, %v179_v40  ;;  %v123_v42 = vadd.f32 %v642_v28, %v122_v41 }
  0x93   :  { %v168_v43 = vmul.f32 0.25, %v123_v42  ;;  %v227_v44 = vpop.f32.mrf.mxu1 }
  0x94   :  { %v158_v45 = vpop.f32.mrf.mxu3  ;;  %v228_v46 = vadd.f32 %v647_v30, %v227_v44 }
  0x95   :  { %v316_v47 = vpop.f32.mrf.mxu2  ;;  %184 = vst.msk [vmem:[%s901_s7 + $0x8] sm:$0xff] %vm53_vm0, %v168_v43  ;;  %v159_v48 = vadd.f32 %v642_v28, %v158_v45 }
  0x96   :  { %v317_v49 = vadd.f32 %v653_v32, %v316_v47  ;;  %273 = vst.msk [vmem:[%s902_s8 + $0x8] sm:$0xff] %vm53_vm0, %v228_v46 }
  0x97   :  { %v180_v50 = vmul.f32 0.25, %v159_v48 }
  0x98   :  { %362 = vst.msk [vmem:[%s903_s9 + $0x8] sm:$0xff] %vm53_vm0, %v317_v49  ;;  %v125_v51 = vpop.f32.mrf.mxu0 }
  0x99   :  { %196 = vst.msk [vmem:[%s901_s7 + $0x68] sm:$0xff] %vm53_vm0, %v180_v50  ;;  %v126_v52 = vadd.f32 %v642_v28, %v125_v51 }
  0x9b   :  { %v169_v53 = vmul.f32 0.25, %v126_v52  ;;  %v230_v54 = vpop.f32.mrf.mxu1 }
  0x9c   :  { %v161_v55 = vpop.f32.mrf.mxu3  ;;  %v231_v56 = vadd.f32 %v647_v30, %v230_v54 }
  0x9d   :  { %v319_v57 = vpop.f32.mrf.mxu2  ;;  %185 = vst.msk [vmem:[%s901_s7 + $0x10] sm:$0xff] %vm53_vm0, %v169_v53  ;;  %v162_v58 = vadd.f32 %v642_v28, %v161_v55 }
  0x9e   :  { %v320_v59 = vadd.f32 %v653_v32, %v319_v57  ;;  %274 = vst.msk [vmem:[%s902_s8 + $0x10] sm:$0xff] %vm53_vm0, %v231_v56 }
  0x9f   :  { %v181_v60 = vmul.f32 0.25, %v162_v58 }
  0xa0   :  { %363 = vst.msk [vmem:[%s903_s9 + $0x10] sm:$0xff] %vm53_vm0, %v320_v59  ;;  %v128_v61 = vpop.f32.mrf.mxu0 }
  0xa1   :  { %197 = vst.msk [vmem:[%s901_s7 + $0x70] sm:$0xff] %vm53_vm0, %v181_v60  ;;  %v129_v62 = vadd.f32 %v642_v28, %v128_v61 }
  0xa3   :  { %v170_v63 = vmul.f32 0.25, %v129_v62  ;;  %v233_v0 = vpop.f32.mrf.mxu1 }
  0xa4   :  { %v164_v1 = vpop.f32.mrf.mxu3  ;;  %v234_v2 = vadd.f32 %v647_v30, %v233_v0 }
  0xa5   :  { %v322_v3 = vpop.f32.mrf.mxu2  ;;  %186 = vst.msk [vmem:[%s901_s7 + $0x18] sm:$0xff] %vm53_vm0, %v170_v63  ;;  %v165_v4 = vadd.f32 %v642_v28, %v164_v1 }
  0xa6   :  { %v323_v5 = vadd.f32 %v653_v32, %v322_v3  ;;  %275 = vst.msk [vmem:[%s902_s8 + $0x18] sm:$0xff] %vm53_vm0, %v234_v2 }
  0xa7   :  { %v182_v6 = vmul.f32 0.25, %v165_v4 }
  0xa8   :  { %364 = vst.msk [vmem:[%s903_s9 + $0x18] sm:$0xff] %vm53_vm0, %v323_v5  ;;  %v131_v7 = vpop.f32.mrf.mxu0 }
  0xa9   :  { %198 = vst.msk [vmem:[%s901_s7 + $0x78] sm:$0xff] %vm53_vm0, %v182_v6  ;;  %v132_v8 = vadd.f32 %v642_v28, %v131_v7 }
  0xab   :  { %v171_v9 = vmul.f32 0.25, %v132_v8  ;;  %v236_v10 = vpop.f32.mrf.mxu1 }
  0xac   :  { %v237_v11 = vadd.f32 %v647_v30, %v236_v10  ;;  %v260_v12 = vpop.f32.mrf.mxu3 }
  0xad   :  { %v325_v13 = vpop.f32.mrf.mxu2  ;;  %187 = vst.msk [vmem:[%s901_s7 + $0x20] sm:$0xff] %vm53_vm0, %v171_v9  ;;  %v261_v14 = vadd.f32 %v647_v30, %v260_v12 }
  0xae   :  { %v326_v15 = vadd.f32 %v653_v32, %v325_v13  ;;  %276 = vst.msk [vmem:[%s902_s8 + $0x20] sm:$0xff] %vm53_vm0, %v237_v11 }
  0xaf   :  { %284 = vst.msk [vmem:[%s902_s8 + $0x60] sm:$0xff] %vm53_vm0, %v261_v14 }
  0xb0   :  { %365 = vst.msk [vmem:[%s903_s9 + $0x20] sm:$0xff] %vm53_vm0, %v326_v15  ;;  %v134_v16 = vpop.f32.mrf.mxu0 }
  0xb1   :  { %v135_v17 = vadd.f32 %v642_v28, %v134_v16 }
  0xb3   :  { %v172_v18 = vmul.f32 0.25, %v135_v17  ;;  %v239_v19 = vpop.f32.mrf.mxu1 }
  0xb4   :  { %v240_v20 = vadd.f32 %v647_v30, %v239_v19  ;;  %v263_v21 = vpop.f32.mrf.mxu3 }
  0xb5   :  { %v328_v22 = vpop.f32.mrf.mxu2  ;;  %188 = vst.msk [vmem:[%s901_s7 + $0x28] sm:$0xff] %vm53_vm0, %v172_v18  ;;  %v264_v23 = vadd.f32 %v647_v30, %v263_v21 }
  0xb6   :  { %v329_v24 = vadd.f32 %v653_v32, %v328_v22  ;;  %277 = vst.msk [vmem:[%s902_s8 + $0x28] sm:$0xff] %vm53_vm0, %v240_v20 }
  0xb7   :  { %285 = vst.msk [vmem:[%s902_s8 + $0x68] sm:$0xff] %vm53_vm0, %v264_v23 }
  0xb8   :  { %366 = vst.msk [vmem:[%s903_s9 + $0x28] sm:$0xff] %vm53_vm0, %v329_v24  ;;  %v137_v25 = vpop.f32.mrf.mxu0 }
  0xb9   :  { %v138_v26 = vadd.f32 %v642_v28, %v137_v25 }
  0xbb   :  { %v173_v27 = vmul.f32 0.25, %v138_v26  ;;  %v242_v29 = vpop.f32.mrf.mxu1 }
  0xbc   :  { %v243_v31 = vadd.f32 %v647_v30, %v242_v29  ;;  %v266_v33 = vpop.f32.mrf.mxu3 }
  0xbd   :  { %v331_v34 = vpop.f32.mrf.mxu2  ;;  %189 = vst.msk [vmem:[%s901_s7 + $0x30] sm:$0xff] %vm53_vm0, %v173_v27  ;;  %v267_v35 = vadd.f32 %v647_v30, %v266_v33 }
  0xbe   :  { %v332_v36 = vadd.f32 %v653_v32, %v331_v34  ;;  %278 = vst.msk [vmem:[%s902_s8 + $0x30] sm:$0xff] %vm53_vm0, %v243_v31 }
  0xbf   :  { %286 = vst.msk [vmem:[%s902_s8 + $0x70] sm:$0xff] %vm53_vm0, %v267_v35 }
  0xc0   :  { %367 = vst.msk [vmem:[%s903_s9 + $0x30] sm:$0xff] %vm53_vm0, %v332_v36  ;;  %v140_v37 = vpop.f32.mrf.mxu0 }
  0xc1   :  { %v141_v38 = vadd.f32 %v642_v28, %v140_v37 }
  0xc3   :  { %v174_v39 = vmul.f32 0.25, %v141_v38  ;;  %v245_v40 = vpop.f32.mrf.mxu1 }
  0xc4   :  { %v246_v41 = vadd.f32 %v647_v30, %v245_v40  ;;  %v269_v42 = vpop.f32.mrf.mxu3 }
  0xc5   :  { %v334_v43 = vpop.f32.mrf.mxu2  ;;  %190 = vst.msk [vmem:[%s901_s7 + $0x38] sm:$0xff] %vm53_vm0, %v174_v39  ;;  %v270_v44 = vadd.f32 %v647_v30, %v269_v42 }
  0xc6   :  { %v335_v45 = vadd.f32 %v653_v32, %v334_v43  ;;  %279 = vst.msk [vmem:[%s902_s8 + $0x38] sm:$0xff] %vm53_vm0, %v246_v41 }
  0xc7   :  { %287 = vst.msk [vmem:[%s902_s8 + $0x78] sm:$0xff] %vm53_vm0, %v270_v44 }
  0xc8   :  { %368 = vst.msk [vmem:[%s903_s9 + $0x38] sm:$0xff] %vm53_vm0, %v335_v45  ;;  %v143_v46 = vpop.f32.mrf.mxu0 }
  0xc9   :  { %v144_v47 = vadd.f32 %v642_v28, %v143_v46 }
  0xcb   :  { %v175_v48 = vmul.f32 0.25, %v144_v47  ;;  %v248_v49 = vpop.f32.mrf.mxu1 }
  0xcc   :  { %v249_v50 = vadd.f32 %v647_v30, %v248_v49  ;;  %v349_v52 = vpop.f32.mrf.mxu3 }
  0xcd   :  { %v337_v51 = vpop.f32.mrf.mxu2  ;;  %191 = vst.msk [vmem:[%s901_s7 + $0x40] sm:$0xff] %vm53_vm0, %v175_v48  ;;  %v350_v54 = vadd.f32 %v653_v32, %v349_v52 }
  0xce   :  { %v338_v53 = vadd.f32 %v653_v32, %v337_v51  ;;  %280 = vst.msk [vmem:[%s902_s8 + $0x40] sm:$0xff] %vm53_vm0, %v249_v50 }
  0xcf   :  { %373 = vst.msk [vmem:[%s903_s9 + $0x60] sm:$0xff] %vm53_vm0, %v350_v54 }
  0xd0   :  { %369 = vst.msk [vmem:[%s903_s9 + $0x40] sm:$0xff] %vm53_vm0, %v338_v53  ;;  %v146_v55 = vpop.f32.mrf.mxu0 }
  0xd1   :  { %v147_v56 = vadd.f32 %v642_v28, %v146_v55 }
  0xd3   :  { %v176_v57 = vmul.f32 0.25, %v147_v56  ;;  %v251_v58 = vpop.f32.mrf.mxu1 }
  0xd4   :  { %v252_v59 = vadd.f32 %v647_v30, %v251_v58  ;;  %v352_v61 = vpop.f32.mrf.mxu3 }
  0xd5   :  { %v340_v60 = vpop.f32.mrf.mxu2  ;;  %192 = vst.msk [vmem:[%s901_s7 + $0x48] sm:$0xff] %vm53_vm0, %v176_v57  ;;  %v353_v63 = vadd.f32 %v653_v32, %v352_v61 }
  0xd6   :  { %v341_v62 = vadd.f32 %v653_v32, %v340_v60  ;;  %281 = vst.msk [vmem:[%s902_s8 + $0x48] sm:$0xff] %vm53_vm0, %v252_v59 }
  0xd7   :  { %374 = vst.msk [vmem:[%s903_s9 + $0x68] sm:$0xff] %vm53_vm0, %v353_v63 }
  0xd8   :  { %370 = vst.msk [vmem:[%s903_s9 + $0x48] sm:$0xff] %vm53_vm0, %v341_v62  ;;  %v149_v0 = vpop.f32.mrf.mxu0 }
  0xd9   :  { %v150_v1 = vadd.f32 %v642_v28, %v149_v0 }
  0xdb   :  { %v177_v2 = vmul.f32 0.25, %v150_v1  ;;  %v254_v3 = vpop.f32.mrf.mxu1 }
  0xdc   :  { %v255_v4 = vadd.f32 %v647_v30, %v254_v3  ;;  %v355_v6 = vpop.f32.mrf.mxu3 }
  0xdd   :  { %v343_v5 = vpop.f32.mrf.mxu2  ;;  %193 = vst.msk [vmem:[%s901_s7 + $0x50] sm:$0xff] %vm53_vm0, %v177_v2  ;;  %v356_v8 = vadd.f32 %v653_v32, %v355_v6 }
  0xde   :  { %v344_v7 = vadd.f32 %v653_v32, %v343_v5  ;;  %282 = vst.msk [vmem:[%s902_s8 + $0x50] sm:$0xff] %vm53_vm0, %v255_v4 }
  0xdf   :  { %375 = vst.msk [vmem:[%s903_s9 + $0x70] sm:$0xff] %vm53_vm0, %v356_v8 }
  0xe0   :  { %371 = vst.msk [vmem:[%s903_s9 + $0x50] sm:$0xff] %vm53_vm0, %v344_v7  ;;  %v152_v9 = vpop.f32.mrf.mxu0 }
  0xe1   :  { %v153_v10 = vadd.f32 %v642_v28, %v152_v9 }
  0xe3   :  { %v178_v11 = vmul.f32 0.25, %v153_v10  ;;  %v257_v12 = vpop.f32.mrf.mxu1 }
  0xe4   :  { %v258_v13 = vadd.f32 %v647_v30, %v257_v12  ;;  %v358_v15 = vpop.f32.mrf.mxu3 }
  0xe5   :  { %v346_v14 = vpop.f32.mrf.mxu2  ;;  %194 = vst.msk [vmem:[%s901_s7 + $0x58] sm:$0xff] %vm53_vm0, %v178_v11  ;;  %v359_v17 = vadd.f32 %v653_v32, %v358_v15 }
  0xe6   :  { %v347_v16 = vadd.f32 %v653_v32, %v346_v14  ;;  %283 = vst.msk [vmem:[%s902_s8 + $0x58] sm:$0xff] %vm53_vm0, %v258_v13 }
  0xe7   :  { %376 = vst.msk [vmem:[%s903_s9 + $0x78] sm:$0xff] %vm53_vm0, %v359_v17 }
  0xe8   :  { %372 = vst.msk [vmem:[%s903_s9 + $0x58] sm:$0xff] %vm53_vm0, %v347_v16 }

</bundles_post_ra>
